<compile_context>
chip_gen: v7x
topology: tpu7x:2x2x1
jax: 0.10.0
libtpu: 0.0.40
codegen_flags: <defaults>
</compile_context>

<pallas_src>
import jax
import jax.numpy as jnp
import numpy as np
from jax.experimental import pallas as pl
from jax.experimental.pallas import tpu as pltpu


_IGNORE_INDEX = -100  # F.cross_entropy default ignore_index


# ---------------------------------------------------------------------------
# Tiled token-level cross entropy kernel
# ---------------------------------------------------------------------------
def _ce_kernel(logits_ref, labels_ref, out_ref):
    """Per-tile token cross entropy.

    logits_ref: (1, TILE_T, V)  native dtype (e.g. bf16) straight off the DMA
    labels_ref: (1, TILE_T, 1)  int32 shifted labels (padded with -100)
    out_ref   : (1, TILE_T, 2)  f32  [:, :, 0] = -log p(label) (0 where ignored)
                                      [:, :, 1] = 1.0 where label != -100
    """
    x = logits_ref[0]                                    # (T_t, V), native dtype
    lbl = labels_ref[0]                                  # (T_t, 1), int32

    # Row-max and label gather stay in the native (bf16) dtype: max / compare /
    # select / +0 accumulation are all exact, so no precision is lost and no
    # whole-tile f32 copy has to live in VMEM for these.
    m = jnp.max(x, axis=-1, keepdims=True)               # (T_t, 1)
    col = jax.lax.broadcasted_iota(jnp.int32, x.shape, 1)
    gathered = jnp.sum(jnp.where(col == lbl, x, jnp.zeros_like(x)),
                       axis=-1, keepdims=True)           # (T_t, 1), exact

    # Only the exp chain needs f32. The subtraction of two bf16 values is exact
    # in f32, so this matches the f32 reference while keeping the live f32
    # temps to ~2 tile-sized arrays (diff and its exp).
    xm = x.astype(jnp.float32) - m.astype(jnp.float32)   # (T_t, V) f32
    lse = m.astype(jnp.float32) + jnp.log(
        jnp.sum(jnp.exp(xm), axis=-1, keepdims=True))    # (T_t, 1) f32
    # TODO(synk): on v7x, if EUP becomes the binding slot, optionally run exp on
    # packed bf16 and accumulate the sum in f32 (needs relaxed test tolerance).

    # Rows whose (padded / shifted) label is -100 are masked out; this also
    # covers ragged time tiles that read past the logits' time extent (all ops
    # above are row-local, so OOB rows never contaminate valid rows).
    valid = lbl != _IGNORE_INDEX
    nll = jnp.where(valid, lse - gathered.astype(jnp.float32), 0.0)
    out_ref[0] = jnp.concatenate([nll, valid.astype(jnp.float32)], axis=-1)


def _vmem_capacity_bytes():
    try:
        cap = getattr(pltpu.get_tpu_info(), "vmem_capacity_bytes", None)
        if cap:
            return int(cap)
    except Exception:
        pass
    return 64 * 1024 * 1024  # conservative fallback (v7x per-TC VMEM)


def _choose_tile_t(t, v, in_itemsize, budget_bytes):
    """Largest time-tile whose double-buffered input + f32 temps fit `budget`."""
    # Per time-row: double-buffered native-dtype input (2 * V * isz) plus
    # ~3 tile-sized f32 intermediates inside the kernel (diff, exp, slack).
    bytes_per_row = v * (2 * in_itemsize + 3 * 4)
    max_rows = max(16, (budget_bytes // bytes_per_row) // 16 * 16)
    if t <= max_rows:
        return t                       # full time axis as one exact block
    return min(max_rows, 1024)         # multiple of 16, raised cap for small V


def _lm_ce_loss(logits, chosen_labels):
    """Mean token cross entropy over logits[:B, :T-1, :] vs chosen_labels[:, 1:].

    Matches F.cross_entropy defaults (mean reduction, ignore_index=-100).
    No slice / cast of the logits is materialized in HBM.
    """
    b, t = chosen_labels.shape
    v = logits.shape[-1]
    in_isz = jnp.dtype(logits.dtype).itemsize

    cap = _vmem_capacity_bytes()
    budget = min(cap // 2, 48 * 1024 * 1024)          # tile budget (input db + f32 temps)
    tile_t = _choose_tile_t(t, v, in_isz, budget)
    num_t = pl.cdiv(t - 1, tile_t)
    t_pad = num_t * tile_t

    # Shifted labels (tiny copy: B*T int32), padded with ignore_index so rows at
    # or past time T-1 (and any ragged tail of the last time tile) get masked.
    shift_labels = chosen_labels[:, 1:].astype(jnp.int32)
    shift_labels = jnp.pad(shift_labels, ((0, 0), (0, t_pad - (t - 1))),
                           constant_values=_IGNORE_INDEX)
    labels3 = shift_labels.reshape(b, t_pad, 1)

    # Scoped-VMEM limit sized for this kernel: input double buffer + f32 temps
    # + slack, clamped well below physical capacity.
    needed = tile_t * v * (2 * in_isz + 3 * 4) + 8 * 1024 * 1024
    vmem_limit = int(min(max(needed, 32 * 1024 * 1024), cap * 3 // 4))

    # TODO(synk): for very large vocabularies (V >= ~64k) add a trailing
    # "arbitrary" grid axis over V with an online-logsumexp accumulator so the
    # per-tile VMEM footprint stays bounded on v7x.
    out = pl.pallas_call(
        _ce_kernel,
        out_shape=jax.ShapeDtypeStruct((b, t_pad, 2), jnp.float32),
        # Long time axis first so the megacore split (v7x) shards it even for
        # the small batch sizes typical of RM pairs.
        grid=(num_t, b),
        in_specs=[
            # logits may have more batch rows than labels (chosen+rejected
            # concatenated); the index_map only ever touches b < B and the
            # needed time tiles, so no HBM slice/copy of the big tensor.
            pl.BlockSpec((1, tile_t, v), lambda ti, bi: (bi, ti, 0)),
            pl.BlockSpec((1, tile_t, 1), lambda ti, bi: (bi, ti, 0)),
        ],
        out_specs=pl.BlockSpec((1, tile_t, 2), lambda ti, bi: (bi, ti, 0)),
        compiler_params=pltpu.CompilerParams(
            dimension_semantics=("parallel", "parallel"),
            vmem_limit_bytes=vmem_limit),
        cost_estimate=pl.CostEstimate(
            flops=6 * b * (t - 1) * v,
            transcendentals=b * (t - 1) * v,
            bytes_accessed=b * (t - 1) * v * in_isz + 12 * b * t_pad),
    )(logits, labels3)

    nll = out[..., 0]
    valid = out[..., 1]
    # Mean over non-ignored tokens (NaN if every label is ignored, like torch).
    return jnp.sum(nll) / jnp.sum(valid)


# ---------------------------------------------------------------------------
# Module equivalent
# ---------------------------------------------------------------------------
class LogExpWithLMLoss:
    """Pairwise Loss and Language Model Loss for Reward Model (Pallas/TPU)."""

    def __init__(self, use_margin=True, lm_loss_coef=1e-06):
        self.use_margin = use_margin
        self.lm_loss_coef = lm_loss_coef

    def __call__(self, chosen_reward, reject_reward, chosen_labels, logits,
                 margin=None, **kwargs):
        cr = chosen_reward.astype(jnp.float32)
        rr = reject_reward.astype(jnp.float32)
        if margin is not None and self.use_margin:
            diff = margin.astype(jnp.float32) + rr - cr
        else:
            diff = rr - cr
        # Pairwise RM loss over B scalars: plain jnp (a pallas_call here would
        # be pure launch/DMA overhead). softplus == log(1 + exp(diff)), stable.
        loss = jnp.mean(jax.nn.softplus(diff))
        if self.lm_loss_coef > 1e-06:
            loss = loss + jnp.float32(self.lm_loss_coef) * _lm_ce_loss(
                logits, chosen_labels)
        return loss


# ---------------------------------------------------------------------------
# Pure-JAX reference (for correctness check only)
# ---------------------------------------------------------------------------
def _reference_loss(chosen_reward, reject_reward, chosen_labels, logits,
                    margin, use_margin, lm_loss_coef):
    diff = (reject_reward - chosen_reward).astype(jnp.float32)
    if margin is not None and use_margin:
        diff = diff + margin.astype(jnp.float32)
    loss = jnp.mean(jnp.log1p(jnp.exp(diff)))
    if lm_loss_coef > 1e-06:
        b, t = chosen_labels.shape
        x = logits[:b, : t - 1, :].astype(jnp.float32).reshape(-1, logits.shape[-1])
        y = chosen_labels[:, 1:].reshape(-1)
        logp = jax.nn.log_softmax(x, axis=-1)
        ok = y != _IGNORE_INDEX
        y_safe = jnp.where(ok, y, 0)
        nll = -jnp.take_along_axis(logp, y_safe[:, None], axis=-1)[:, 0]
        ce = jnp.sum(jnp.where(ok, nll, 0.0)) / jnp.sum(ok)
        loss = loss + jnp.float32(lm_loss_coef) * ce
    return loss


if __name__ == "__main__":
    key = jax.random.PRNGKey(0)
    B, T, V = 2, 8, 256  # B pairs, seq len T, vocab V (lane-aligned)

    k1, k2, k3, k4, k5 = jax.random.split(key, 5)
    chosen_reward = jax.random.normal(k1, (B,), dtype=jnp.float32)
    reject_reward = jax.random.normal(k2, (B,), dtype=jnp.float32)
    margin = jax.nn.softplus(jax.random.normal(k3, (B,), dtype=jnp.float32))
    # logits for concatenated (chosen, rejected) -> 2B batch rows; the kernel's
    # index_map only touches the first B rows (no slice copy). Keep bf16 on the
    # DMA path, as in real RM training.
    logits = jax.random.normal(k4, (2 * B, T, V), dtype=jnp.float32).astype(jnp.bfloat16)
    chosen_labels = jax.random.randint(k5, (B, T), 0, V, dtype=jnp.int32)
    chosen_labels = chosen_labels.at[:, 0].set(-100)  # ignored prompt token

    # default config: lm_loss_coef == 1e-6 -> LM loss branch skipped
    loss_default = LogExpWithLMLoss(use_margin=True, lm_loss_coef=1e-06)(
        chosen_reward, reject_reward, chosen_labels, logits, margin=margin)
    jax.block_until_ready(loss_default)

    # coef > 1e-6 -> exercises the tiled cross-entropy Pallas kernel
    loss_with_lm = LogExpWithLMLoss(use_margin=True, lm_loss_coef=1e-03)(
        chosen_reward, reject_reward, chosen_labels, logits, margin=margin)
    jax.block_until_ready(loss_with_lm)

    ref = _reference_loss(chosen_reward, reject_reward, chosen_labels, logits,
                          margin, True, 1e-03)
    np.testing.assert_allclose(np.asarray(loss_with_lm), np.asarray(ref),
                               rtol=2e-5, atol=2e-5)

    print("KERNEL_OK")
</pallas_src>

<mosaic_0001>
module attributes {stable_mosaic.version = 11 : i64} {
  func.func @_ce_kernel(%arg0: i32, %arg1: i32, %arg2: memref<1x8x256xbf16, #tpu.memory_space<vmem>>, %arg3: memref<1x8x1xi32, #tpu.memory_space<vmem>>, %arg4: memref<1x8x2xf32, #tpu.memory_space<vmem>>) attributes {dimension_semantics = [#tpu.dimension_semantics<parallel>, #tpu.dimension_semantics<parallel>], iteration_bounds = array<i64: 1, 2>, scalar_prefetch = 0 : i64, scratch_operands = 0 : i64, tpu.core_type = #tpu.core_type<tc>, window_params = [{transform_indices = @transform_0, window_bounds = array<i64: 1, 8, 256>}, {transform_indices = @transform_1, window_bounds = array<i64: 1, 8, 1>}, {transform_indices = @transform_2, window_bounds = array<i64: 1, 8, 2>}]} {
    %c0 = arith.constant 0 : index
    %c0_0 = arith.constant 0 : index
    %c0_1 = arith.constant 0 : index
    %0 = vector.load %arg2[%c0, %c0_0, %c0_1] : memref<1x8x256xbf16, #tpu.memory_space<vmem>>, vector<1x8x256xbf16>
    %1 = vector.shape_cast %0 : vector<1x8x256xbf16> to vector<8x256xbf16>
    %c0_2 = arith.constant 0 : index
    %c0_3 = arith.constant 0 : index
    %c0_4 = arith.constant 0 : index
    %2 = vector.load %arg3[%c0_2, %c0_3, %c0_4] : memref<1x8x1xi32, #tpu.memory_space<vmem>>, vector<1x8x1xi32>
    %3 = vector.shape_cast %2 : vector<1x8x1xi32> to vector<8x1xi32>
    %cst = arith.constant dense<0xFF80> : vector<8xbf16>
    %4 = vector.multi_reduction <maximumf>, %1, %cst [1] : vector<8x256xbf16> to vector<8xbf16>
    %5 = vector.shape_cast %4 : vector<8xbf16> to vector<8x1xbf16>
    %6 = tpu.iota {dimensions = array<i32: 1>} : vector<8x256xi32>
    %7 = vector.broadcast %3 : vector<8x1xi32> to vector<8x256xi32>
    %8 = arith.cmpi eq, %6, %7 : vector<8x256xi32>
    %cst_5 = arith.constant 0.000000e+00 : bf16
    %9 = vector.broadcast %cst_5 : bf16 to vector<8x256xbf16>
    %10 = arith.select %8, %1, %9 : vector<8x256xi1>, vector<8x256xbf16>
    %11 = arith.extf %10 : vector<8x256xbf16> to vector<8x256xf32>
    %cst_6 = arith.constant dense<0.000000e+00> : vector<8xf32>
    %12 = vector.multi_reduction <add>, %11, %cst_6 [1] : vector<8x256xf32> to vector<8xf32>
    %13 = vector.shape_cast %12 : vector<8xf32> to vector<8x1xf32>
    %14 = arith.truncf %13 : vector<8x1xf32> to vector<8x1xbf16>
    %15 = arith.extf %1 : vector<8x256xbf16> to vector<8x256xf32>
    %16 = arith.extf %5 : vector<8x1xbf16> to vector<8x1xf32>
    %17 = vector.broadcast %16 : vector<8x1xf32> to vector<8x256xf32>
    %18 = arith.subf %15, %17 : vector<8x256xf32>
    %19 = arith.extf %5 : vector<8x1xbf16> to vector<8x1xf32>
    %20 = math.exp %18 : vector<8x256xf32>
    %cst_7 = arith.constant dense<0.000000e+00> : vector<8xf32>
    %21 = vector.multi_reduction <add>, %20, %cst_7 [1] : vector<8x256xf32> to vector<8xf32>
    %22 = vector.shape_cast %21 : vector<8xf32> to vector<8x1xf32>
    %23 = math.log %22 : vector<8x1xf32>
    %24 = arith.addf %19, %23 : vector<8x1xf32>
    %c-100_i32 = arith.constant -100 : i32
    %25 = vector.broadcast %c-100_i32 : i32 to vector<8x1xi32>
    %26 = arith.cmpi ne, %3, %25 : vector<8x1xi32>
    %27 = arith.extf %14 : vector<8x1xbf16> to vector<8x1xf32>
    %28 = arith.subf %24, %27 : vector<8x1xf32>
    %cst_8 = arith.constant 0.000000e+00 : f32
    %29 = vector.broadcast %cst_8 : f32 to vector<8x1xf32>
    %30 = arith.select %26, %28, %29 : vector<8x1xi1>, vector<8x1xf32>
    %31 = arith.extui %26 : vector<8x1xi1> to vector<8x1xi32>
    %32 = arith.sitofp %31 : vector<8x1xi32> to vector<8x1xf32>
    %33 = tpu.concatenate %30, %32 in 1 : vector<8x1xf32>, vector<8x1xf32> -> vector<8x2xf32>
    %c0_9 = arith.constant 0 : index
    %c0_10 = arith.constant 0 : index
    %c0_11 = arith.constant 0 : index
    %34 = vector.load %arg4[%c0_9, %c0_10, %c0_11] : memref<1x8x2xf32, #tpu.memory_space<vmem>>, vector<1x8x2xf32>
    %35 = vector.shape_cast %34 : vector<1x8x2xf32> to vector<8x2xf32>
    %36 = vector.shape_cast %33 : vector<8x2xf32> to vector<1x8x2xf32>
    tpu.vector_store %arg4[%c0_9, %c0_10, %c0_11], %36 {strides = array<i32>} : memref<1x8x2xf32, #tpu.memory_space<vmem>>, vector<1x8x2xf32>,
    return
  }
  func.func @transform_0(%arg0: i32, %arg1: i32) -> (i32, i32, i32) {
    %c0_i32 = arith.constant 0 : i32
    %c0_i32_0 = arith.constant 0 : i32
    return %arg1, %arg0, %c0_i32 : i32, i32, i32
  }
  func.func @transform_1(%arg0: i32, %arg1: i32) -> (i32, i32, i32) {
    %c0_i32 = arith.constant 0 : i32
    %c0_i32_0 = arith.constant 0 : i32
    return %arg1, %arg0, %c0_i32 : i32, i32, i32
  }
  func.func @transform_2(%arg0: i32, %arg1: i32) -> (i32, i32, i32) {
    %c0_i32 = arith.constant 0 : i32
    %c0_i32_0 = arith.constant 0 : i32
    return %arg1, %arg0, %c0_i32 : i32, i32, i32
  }
}

</mosaic_0001>

<bundles_post_ra>
// kernel: tpu_custom_call.1
= control target key start
LH: loop header
LB: loop body
LE: loop exit
PB: predicated region body
PF: predicated region fallthrough
CT: control target
= control target key end

     0   :  { %7 = vsyncpa [#allocation3], 0  ;;  %s700_s0 = inlined_call_operand.hbm [shape: bf16[4,8,256], index: 0, kind: input, shape index: {}]   ;;  %s701_s1 = inlined_call_operand.vmem [shape: s32[2,8,1], index: 1, kind: input, shape index: {}]   ;;  %s702_s2 = inlined_call_operand.vmem [shape: f32[2,8,2], index: 2, kind: output, shape index: {}]  }
   0x1   :  { %9 = vsyncpa [#allocation3 + $0x1], 0  ;;  %s563_s9 = smov 0   ;;  %s565_s10 = smov 0  }
   0x2   :  { %s567_s11 = smov 0   ;;  %s569_s12 = smov 0  }
   0x3   :  { %s571_s13 = smov 0   ;;  %s573_s14 = smov 0  }
   0x4 LB: > { %s378_s15 = sadd.s32 4294967295, %s542_s14   ;;  %s24_s16 = sadd.s32 1, %s538_s13  ;;  %s542_s14 = sphi %s573_s14, %s15_s14   ;;  %s538_s13 = sphi %s571_s13, %s712_s13   ;;  %s534_s12 = sphi %s569_s12, %s711_s12   ;;  %s530_s11 = sphi %s567_s11, %s710_s11   ;;  %s526_s10 = sphi %s565_s10, %s709_s10   ;;  %s522_s9 = sphi %s563_s9, %s708_s9  }
   0x5   : > { %p25_p0 = scmp.ge.s32.totalorder %s24_s16, 2  ;;  %s36_s17 = sadd.s32 1, %s530_s11 }
   0x6   : > { %p43_p1 = scmp.ne.s32.totalorder %s530_s11, %s526_s10  ;;  %p44_p2 = scmp.eq.s32.totalorder %s542_s14, 0 }
   0x7   : > { %s714_s16 = smov (%p25_p0, %s24_s16), 0  ;;  %p49_p4 = scmp.ne.s32.totalorder %s526_s10, %s522_s9 }
   0x8   : > { %p599_p3 = por %p44_p2, %p43_p1  ;;  %s31_s19 = ssub.s32 %s538_s13, %s714_s16 }
   0x9   : > { %p50_p5 = scmp.eq.s32.totalorder %s378_s15, 0  ;;  %p34_p6 = scmp.eq.s32.totalorder %s31_s19, 0 }
   0xa   : > { %p401_p8 = scmp.lt.s32.totalorder %s542_s14, 2  ;;  %s129_s22 = sand.u32 1, %s530_s11  }
   0xb   : > { %p606_p7 = por %p50_p5, %p49_p4  ;;  %s394_s23 = sshll.u32 %s538_s13, 7 }
   0xc   : > { %s612_s21 = scalar_select %p34_p6, %s530_s11, %s36_s17  }
   0xd   : > { %s382_s24 = sshll.u32 %s129_s22, 3  ;;  %s619_s27 = scalar_lea.hbm %s700_s0, %s394_s23 }
   0xe   : > { %s133_s28 = scalar_lea.vmem [#allocation2], %s382_s24  ;;  %p623_p9 = pnand %p401_p8, %p599_p3 }
   0xf   : > { %s143_s29 = sshll.u32 %s133_s28, 4  ;;  %s130_s3 = scalar_lea.sflag [#allocation3], %s129_s22  ;;  %s627_s29 = int_to_ptr.vmem [resolvable:$true] %s143_s29 }
  0x10   : > { %s462_s4 = scalar_lea.hbm %s619_s27, 128  ;;  %p464_p13 = pneg %p623_p9 }
  0x11   : > { %p463_p12 = scmp.ne.s32.totalorder %s619_s27, %s462_s4  ;;  %s467_s7 = scalar_lea.hbm %s700_s0, 512 }
  0x12   : > { %p468_p2 = scmp.lt.u32.totalorder %s619_s27, %s700_s0  ;;  %p469_p3 = scmp.lt.u32.totalorder %s467_s7, %s462_s4 }
  0x13   : > { %p465_p0 = pnand %p464_p13, %p463_p12  ;;  %p471_p5 = scmp.lt.u32.totalorder %s462_s4, %s619_s27 }
  0x14   : > { %p470_p4 = por %p469_p3, %p468_p2 }
  0x15   : > { %p466_p1 = pneg %p465_p0 }
  0x16   : > { %p472_p6 = por %p471_p5, %p470_p4 }
  0x18   : > { %p473_p8 = pnand %p472_p6, %p466_p1 }
  0x1a   : > { %476 = shalt.err (!%p473_p8)
}
  0x1b   : > { %s477_s15 = scalar_lea.vmem %s627_s29, 128  ;;  %s544_s17 = smov [#allocation2]  }
  0x1c   : > { %p478_p12 = scmp.ne.s32.totalorder %s627_s29, %s477_s15  ;;  %s482_s18 = sshll.u32 %s544_s17, 4  ;;  %s483_s18 = int_to_ptr.vmem [resolvable:$false] %s482_s18 }
  0x1d   : > { %s484_s19 = scalar_lea.vmem %s483_s18, 256  ;;  %p485_p11 = scmp.lt.s32.totalorder %s627_s29, %s483_s18 }
  0x1e   : > { %p480_p0 = pnand %p478_p12, %p464_p13  ;;  %p486_p2 = scmp.lt.s32.totalorder %s484_s19, %s477_s15 }
  0x20   : > { %p481_p10 = pneg %p480_p0  ;;  %p487_p3 = por %p486_p2, %p485_p11 }
  0x22   : > { %p488_p4 = pnand %p487_p3, %p481_p10 }
  0x24   : > { %491 = shalt.err (!%p488_p4)
}
  0x25   : > { %400 = dma.hbm_to_vmem [thread:$0]  (!%p623_p9), %s619_s27, 128, %s627_s29, %s130_s3  }
  0x26   : > { %p706_p1 = scmp.lt.s32.totalorder %s542_s14, 3  ;;  %p707_p5 = scmp.ge.s32.totalorder %s542_s14, 1 }
  0x28   : > { %p159_p13 = pnand %p707_p5, %p706_p1 }
  0x29   : > { %s164_s22 = sand.u32 (!%p159_p13), 1, %s526_s10  }
  0x2a   : > { %162 = sbr.rel (%p159_p13) target bundleno = 384 (0x180), region = 28  ;;  %s386_s23 = sshll.u32 (!%p159_p13), %s164_s22, 3 }
  0x2b   : > { %s165_s24 = scalar_lea.sflag (!%p159_p13), [#allocation3], %s164_s22  ;;  %s168_s25 = scalar_lea.vmem (!%p159_p13), [#allocation2], %s386_s23 }
  0x31   : > { %517 = dma.done.wait (%p606_p7), %s165_s24, 128  }
  0x32   : > { %519 = vsyncadd (%p606_p7), %s165_s24, 4294967168  ;;  %v545_v0 = vmov 0   ;;  %v214_v1 = vld [vmem:[%s168_s25] sm:$0xff]  ;;  %vm221_vm0 = vcmask 1043456   ;;  %p198_p9 = scmp.lt.s32.totalorder %s534_s12, 1  ;;  %v232_v8 = vlaneseq  ;;  %v546_v27 = vmov 0.0  }
  0x33   : > { %453 = vset.pattern.permute.xlu0 %v545_v0  ;;  %v389_v2 = vcombine.low %v214_v1, %v214_v1  ;;  %v390_v3 = vcombine.high %v214_v1, %v214_v1  ;;  %v248_v9 = vunpack.c.l.bf16 %v214_v1  ;;  %v249_v10 = vunpack.c.h.bf16 %v214_v1  ;;  %s547_s29 = smov 1  }
  0x34   : > { %s716_s12 = smov (!%p198_p9, %s534_s12), 1  ;;  %v233_v13 = vand.u32 127, %v232_v8  ;;  %vm273_vm5 = vcmask 7168   ;;  %vm275_vm6 = vcmask 15360  }
  0x35   : > { %v224_v4 = vsel %vm221_vm0, %v389_v2, 4286644096  ;;  %v227_v5 = vsel %vm221_vm0, %v390_v3, 4286644096  ;;  %s387_s26 = sshll.u32 %s716_s12, 3 }
  0x36   : > { %v229_v6 = vmax.bf16 %v227_v5, %v224_v4  ;;  %s204_s28 = scalar_lea.vmem %s701_s1, %s387_s26  ;;  %v234_v18 = vadd.s32 128, %v233_v13  ;;  %s211_s4 = scalar_lea.vmem %s702_s2, %s387_s26 }
  0x37   : > { %v215_v7 = vld [vmem:[%s204_s28] sm:$0xff] }
  0x38   : > { %230 = vmax.xlane.bf16.xlu0 %v229_v6  ;;  %vm263_vm4 = vcmp.ne.s32.totalorder %v215_v7, 4294967196 }
  0x39   : > { %v391_v28 = vsel %vm263_vm4, 1.0, %v546_v27 }
  0x52   : > { %236 = vperm.xlu0 %453, %v215_v7  }
  0xc9   : > { %v231_v11 = vpop.xlane.xlu0 %230 }
  0xca   : > { %v250_v12 = vunpack.c.l.bf16 %v231_v11 }
  0xcc   : > { %v251_v14 = vsub.f32 %v248_v9, %v250_v12  ;;  %v252_v15 = vsub.f32 %v249_v10, %v250_v12 }
  0xce   : > { %v253_v16 = vmul.f32 1.442695, %v251_v14  ;;  %v255_v17 = vmul.f32 1.442695, %v252_v15 }
  0xd0   : > { %456 = vpow2.f32 %v253_v16 }
  0xd1   : > { %458 = vpow2.f32 %v255_v17  ;;  %v237_v19 = vpop.permute.xlu0 %236 }
  0xd2   : > { %vm238_vm1 = vcmp.eq.s32.totalorder %v233_v13, %v237_v19  ;;  %vm239_vm2 = vcmp.eq.s32.totalorder %v234_v18, %v237_v19 }
  0xd3   : > { %vm240_vm3 = vmpackc.low %vm239_vm2, %vm238_vm1 }
  0xd4   : > { %v241_v20 = vsel %vm240_vm3, %v214_v1, 0 }
  0xd5   : > { %v242_v21 = vunpack.c.l.bf16 %v241_v20  ;;  %v243_v22 = vunpack.c.h.bf16 %v241_v20 }
  0xd7   : > { %v244_v23 = vadd.f32 %v243_v22, %v242_v21 }
  0xd9   : > { %245 = vadd.xlane.f32.xlu1 %v244_v23 }
  0xda   : > { %v457_v24 = vpop.eup %456 }
  0xdb   : > { %v459_v25 = vpop.eup %458 }
  0xdc   : > { %v257_v26 = vadd.f32 %v459_v25, %v457_v24 }
  0xde   : > { %258 = vadd.xlane.f32.xlu1 %v257_v26 }
  0xef   : > { %270 = vrot.lane.b32.xlu1 %v391_v28, %s547_s29 }
 0x166   : > { %v246_v29 = vpop.xlane.xlu1 %245 }
 0x167   : > { %v247_v31 = vpack.c.bf16 %v246_v29, %v246_v29 }
 0x169   : > { %v264_v34 = vunpack.c.l.bf16 %v247_v31 }
 0x16b   : > { %v259_v30 = vpop.xlane.xlu1 %258 }
 0x16c   : > { %460 = vlog2.f32 %v259_v30 }
 0x16f   : > { %v271_v37 = vpop.permute.xlu1 %270 }
 0x176   : > { %v461_v32 = vpop.eup %460 }
 0x177   : > { %v261_v33 = vmul.f32 0.6931472, %v461_v32 }
 0x179   : > { %v262_v35 = vadd.f32 %v261_v33, %v250_v12 }
 0x17b   : > { %v265_v36 = vsub.f32 %v262_v35, %v264_v34 }
 0x17d   : > { %v266_v38 = vsel %vm263_vm4, %v265_v36, 0.0 }
 0x17e   : > { %v274_v39 = vsel %vm273_vm5, %v266_v38, %v271_v37 }
 0x17f   : > { %276 = vst.msk [vmem:[%s211_s4] sm:$0xff] %vm275_vm6, %v274_v39 }
 0x180 PF: > { %s15_s14 = sadd.s32 1, %s542_s14   ;;  %s708_s9 = smov %s526_s10 }
 0x181   : > { %p12_p7 = scmp.ge.s32.totalorder %s15_s14, 4   ;;  %s709_s10 = smov %s530_s11 }
 0x182   : > { %s710_s11 = smov %s612_s21  ;;  %s711_s12 = smov %s538_s13 }
 0x183   : > { %s712_s13 = smov %s714_s16  ;;  %14 = sbr.rel (!%p12_p7) target bundleno = 4 (0x4), region = 71 }
 0x18a   :  { %302 = vsyncpa [#allocation3], 1 }
 0x18b   :  { %304 = vsyncpa [#allocation3 + $0x1], 1 }

</bundles_post_ra>
